<compile_context>
chip_gen: v5e
topology: v5e:2x2
jax: 0.10.0
libtpu: 0.0.40
codegen_flags: <defaults>
</compile_context>

<pallas_src>
import jax
import jax.numpy as jnp
from jax.experimental import pallas as pl
from jax.experimental.pallas import tpu as pltpu

BN_EPS = 1e-5


def _bn_affine_relu(z, bias, gamma, beta):
    """Training-mode BatchNorm1d of (z + bias) over the batch axis, then ReLU.

    z: (B, D) f32 linear output WITHOUT the bias added.  One-pass statistics:
    the bias only shifts the mean (variance is shift-invariant), so it is folded
    into the (1, D) affine instead of a (B, D) add pass.
    """
    inv_n = 1.0 / z.shape[0]
    s1 = jnp.sum(z, axis=0, keepdims=True)
    s2 = jnp.sum(z * z, axis=0, keepdims=True)
    mean_z = s1 * inv_n
    var = s2 * inv_n - mean_z * mean_z          # biased variance, bias-invariant
    mean = mean_z + bias                         # mean of (z + bias)
    a = gamma * jax.lax.rsqrt(var + BN_EPS)      # (1, D)
    shift = beta + (bias - mean) * a             # (1, D)
    return jnp.maximum(z * a + shift, 0.0)       # single (B, D) mul+add+max pass


def projector_kernel(
    x_ref,
    w1_ref, b1_ref, g1_ref, be1_ref,
    w2_hbm, b2_ref, g2_ref, be2_ref,
    w3_hbm, b3_ref, g3_ref, be3_ref,
    w4_hbm, b4_ref,
    out_ref,
    w2_vmem, w3_vmem, w4_vmem, dma_sems,
):
    # Prologue: start streaming the layer-2/3/4 weights so the DMA overlaps
    # the earlier layers' compute.
    w2_cp = pltpu.make_async_copy(w2_hbm, w2_vmem, dma_sems.at[0])
    w3_cp = pltpu.make_async_copy(w3_hbm, w3_vmem, dma_sems.at[1])
    w4_cp = pltpu.make_async_copy(w4_hbm, w4_vmem, dma_sems.at[2])
    w2_cp.start()
    w3_cp.start()
    w4_cp.start()

    x = x_ref[...]  # bf16

    # Layer 1: Linear (bias folded into BN affine) -> BN -> ReLU
    z = jnp.dot(x, w1_ref[...], preferred_element_type=jnp.float32)
    h = _bn_affine_relu(z, b1_ref[...], g1_ref[...], be1_ref[...]).astype(jnp.bfloat16)

    # Layer 2
    w2_cp.wait()
    z = jnp.dot(h, w2_vmem[...], preferred_element_type=jnp.float32)
    h = _bn_affine_relu(z, b2_ref[...], g2_ref[...], be2_ref[...]).astype(jnp.bfloat16)

    # Layer 3
    w3_cp.wait()
    z = jnp.dot(h, w3_vmem[...], preferred_element_type=jnp.float32)
    h = _bn_affine_relu(z, b3_ref[...], g3_ref[...], be3_ref[...]).astype(jnp.bfloat16)

    # Layer 4: Linear only
    w4_cp.wait()
    z = jnp.dot(h, w4_vmem[...], preferred_element_type=jnp.float32) + b4_ref[...]
    out_ref[...] = z.astype(out_ref.dtype)


@jax.jit
def projector_forward(x, params):
    """x: (B, encoder_dim) f32.  params: w1..w4 (in,out) f32, b/g/be as (1,out) f32."""
    B, E = x.shape
    P = params["w4"].shape[1]

    # bf16 MXU inputs; accumulation stays f32 inside the kernel.
    xb = x.astype(jnp.bfloat16)
    w = [params[f"w{i}"].astype(jnp.bfloat16) for i in range(1, 5)]

    args = (
        xb,
        w[0], params["b1"], params["g1"], params["be1"],
        w[1], params["b2"], params["g2"], params["be2"],
        w[2], params["b3"], params["g3"], params["be3"],
        w[3], params["b4"],
    )

    vmem = pl.BlockSpec(memory_space=pltpu.MemorySpace.VMEM)
    hbm = pl.BlockSpec(memory_space=pl.ANY)   # streamed manually inside the kernel
    in_specs = [
        vmem,                      # x
        vmem, vmem, vmem, vmem,    # w1, b1, g1, be1
        hbm,  vmem, vmem, vmem,    # w2 (HBM, streamed), b2, g2, be2
        hbm,  vmem, vmem, vmem,    # w3 (HBM, streamed), b3, g3, be3
        hbm,  vmem,                # w4 (HBM, streamed), b4
    ]

    # VMEM budget: auto-copied operands (x, w1, vectors, out; 2x for pipeline
    # buffering headroom) + the three streamed-weight scratch buffers + slack.
    bf16_b, f32_b = 2, 4
    vmem_in = B * E * bf16_b + E * P * bf16_b + 10 * P * f32_b
    vmem_out = B * P * f32_b
    vmem_scratch = 3 * P * P * bf16_b
    needed = 2 * (vmem_in + vmem_out) + vmem_scratch + (2 << 20)
    vmem_limit = int(min(max(needed, 16 << 20), 48 << 20))  # cap keeps v7x (64 MiB) safe

    flops = 2 * B * E * P + 3 * 2 * B * P * P + 3 * 6 * B * P
    bytes_accessed = (B * E * bf16_b + (E * P + 3 * P * P) * bf16_b
                      + 10 * P * f32_b + B * P * f32_b)
    cost = pl.CostEstimate(flops=flops, transcendentals=3 * P,
                           bytes_accessed=bytes_accessed)

    return pl.pallas_call(
        projector_kernel,
        out_shape=jax.ShapeDtypeStruct((B, P), jnp.float32),
        in_specs=in_specs,
        out_specs=vmem,
        scratch_shapes=[
            pltpu.VMEM((P, P), jnp.bfloat16),   # w2 staging
            pltpu.VMEM((P, P), jnp.bfloat16),   # w3 staging
            pltpu.VMEM((P, P), jnp.bfloat16),   # w4 staging
            pltpu.SemaphoreType.DMA((3,)),
        ],
        compiler_params=pltpu.CompilerParams(vmem_limit_bytes=vmem_limit),
        cost_estimate=cost,
    )(*args)


def init_params(key, encoder_dim, projector_dim):
    """Deterministic init mirroring PyTorch defaults (weights stored f32, (in,out))."""
    dims = [(encoder_dim, projector_dim),
            (projector_dim, projector_dim),
            (projector_dim, projector_dim),
            (projector_dim, projector_dim)]
    params = {}
    for i, (fan_in, fan_out) in enumerate(dims, start=1):
        key, kw, kb = jax.random.split(key, 3)
        bound = 1.0 / jnp.sqrt(fan_in)
        params[f"w{i}"] = jax.random.uniform(
            kw, (fan_in, fan_out), jnp.float32, -bound, bound)   # W.T vs PyTorch
        params[f"b{i}"] = jax.random.uniform(
            kb, (1, fan_out), jnp.float32, -bound, bound)
    for i in range(1, 4):  # BatchNorm affine init: weight=1, bias=0
        params[f"g{i}"] = jnp.ones((1, projector_dim), jnp.float32)
        params[f"be{i}"] = jnp.zeros((1, projector_dim), jnp.float32)
    return params


def reference_forward_f32(x, params):
    """Pure-f32 JAX reference (matches the PyTorch module exactly)."""
    h = x
    for i in range(1, 4):
        h = h @ params[f"w{i}"] + params[f"b{i}"]
        mean = jnp.mean(h, axis=0, keepdims=True)
        var = jnp.mean((h - mean) ** 2, axis=0, keepdims=True)
        h = (h - mean) / jnp.sqrt(var + BN_EPS) * params[f"g{i}"] + params[f"be{i}"]
        h = jnp.maximum(h, 0.0)
    return h @ params["w4"] + params["b4"]


def reference_forward_mixed(x, params):
    """Same math with the kernel's bf16-operand / f32-accumulation numerics."""
    h = x.astype(jnp.bfloat16)
    for i in range(1, 4):
        z = jnp.dot(h, params[f"w{i}"].astype(jnp.bfloat16),
                    preferred_element_type=jnp.float32) + params[f"b{i}"]
        mean = jnp.mean(z, axis=0, keepdims=True)
        var = jnp.mean((z - mean) ** 2, axis=0, keepdims=True)
        z = (z - mean) * jax.lax.rsqrt(var + BN_EPS) * params[f"g{i}"] + params[f"be{i}"]
        h = jnp.maximum(z, 0.0).astype(jnp.bfloat16)
    return jnp.dot(h, params["w4"].astype(jnp.bfloat16),
                   preferred_element_type=jnp.float32) + params["b4"]


if __name__ == "__main__":
    B, ENCODER_DIM, PROJECTOR_DIM = 16, 32, 128

    key = jax.random.PRNGKey(0)
    key, kx = jax.random.split(key)
    x = jax.random.normal(kx, (B, ENCODER_DIM), jnp.float32)
    params = init_params(key, ENCODER_DIM, PROJECTOR_DIM)

    out = jax.block_until_ready(projector_forward(x, params))

    assert out.shape == (B, PROJECTOR_DIM), out.shape
    assert out.dtype == jnp.float32, out.dtype

    # Tight check against a JAX reference using the same bf16/f32 mixed precision.
    ref_mixed = reference_forward_mixed(x, params)
    err_mixed = float(jnp.max(jnp.abs(out - ref_mixed)))
    assert jnp.allclose(out, ref_mixed, atol=1e-2, rtol=1e-2), err_mixed

    # Loose sanity check against the full-f32 (PyTorch-exact) reference: bf16 matmul
    # operands accumulate O(1e-2) absolute differences through three BN layers.
    ref_f32 = reference_forward_f32(x, params)
    err_f32 = float(jnp.max(jnp.abs(out - ref_f32)))
    assert err_f32 < 0.25, err_f32

    print("KERNEL_OK")
</pallas_src>

<mosaic_0001>
module attributes {stable_mosaic.version = 11 : i64} {
  func.func @projector_kernel(%arg0: memref<16x32xbf16, #tpu.memory_space<vmem>>, %arg1: memref<32x128xbf16, #tpu.memory_space<vmem>>, %arg2: memref<1x128xf32, #tpu.memory_space<vmem>>, %arg3: memref<1x128xf32, #tpu.memory_space<vmem>>, %arg4: memref<1x128xf32, #tpu.memory_space<vmem>>, %arg5: memref<128x128xbf16, #tpu.memory_space<any>>, %arg6: memref<1x128xf32, #tpu.memory_space<vmem>>, %arg7: memref<1x128xf32, #tpu.memory_space<vmem>>, %arg8: memref<1x128xf32, #tpu.memory_space<vmem>>, %arg9: memref<128x128xbf16, #tpu.memory_space<any>>, %arg10: memref<1x128xf32, #tpu.memory_space<vmem>>, %arg11: memref<1x128xf32, #tpu.memory_space<vmem>>, %arg12: memref<1x128xf32, #tpu.memory_space<vmem>>, %arg13: memref<128x128xbf16, #tpu.memory_space<any>>, %arg14: memref<1x128xf32, #tpu.memory_space<vmem>>, %arg15: memref<16x128xf32, #tpu.memory_space<vmem>>, %arg16: memref<128x128xbf16, #tpu.memory_space<vmem>>, %arg17: memref<128x128xbf16, #tpu.memory_space<vmem>>, %arg18: memref<128x128xbf16, #tpu.memory_space<vmem>>, %arg19: memref<3x!tpu.dma_semaphore, #tpu.memory_space<semaphore_mem>>) attributes {dimension_semantics = [], scalar_prefetch = 0 : i64, scratch_operands = 4 : i64, tpu.core_type = #tpu.core_type<tc>} {
    %c0_i32 = arith.constant 0 : i32
    %0 = tpu.memref_slice %arg19[%c0_i32] : memref<3x!tpu.dma_semaphore, #tpu.memory_space<semaphore_mem>> -> memref<1x!tpu.dma_semaphore, #tpu.memory_space<semaphore_mem>>
    %1 = tpu.memref_squeeze %0 : memref<1x!tpu.dma_semaphore, #tpu.memory_space<semaphore_mem>> -> memref<!tpu.dma_semaphore, #tpu.memory_space<semaphore_mem>>
    tpu.enqueue_dma source(%arg5 : memref<128x128xbf16, #tpu.memory_space<any>>) target(%arg16 : memref<128x128xbf16, #tpu.memory_space<vmem>>) target_semaphore(%1 : memref<!tpu.dma_semaphore, #tpu.memory_space<semaphore_mem>>)
    %c1_i32 = arith.constant 1 : i32
    %2 = tpu.memref_slice %arg19[%c1_i32] : memref<3x!tpu.dma_semaphore, #tpu.memory_space<semaphore_mem>> -> memref<1x!tpu.dma_semaphore, #tpu.memory_space<semaphore_mem>>
    %3 = tpu.memref_squeeze %2 : memref<1x!tpu.dma_semaphore, #tpu.memory_space<semaphore_mem>> -> memref<!tpu.dma_semaphore, #tpu.memory_space<semaphore_mem>>
    tpu.enqueue_dma source(%arg9 : memref<128x128xbf16, #tpu.memory_space<any>>) target(%arg17 : memref<128x128xbf16, #tpu.memory_space<vmem>>) target_semaphore(%3 : memref<!tpu.dma_semaphore, #tpu.memory_space<semaphore_mem>>)
    %c2_i32 = arith.constant 2 : i32
    %4 = tpu.memref_slice %arg19[%c2_i32] : memref<3x!tpu.dma_semaphore, #tpu.memory_space<semaphore_mem>> -> memref<1x!tpu.dma_semaphore, #tpu.memory_space<semaphore_mem>>
    %5 = tpu.memref_squeeze %4 : memref<1x!tpu.dma_semaphore, #tpu.memory_space<semaphore_mem>> -> memref<!tpu.dma_semaphore, #tpu.memory_space<semaphore_mem>>
    tpu.enqueue_dma source(%arg13 : memref<128x128xbf16, #tpu.memory_space<any>>) target(%arg18 : memref<128x128xbf16, #tpu.memory_space<vmem>>) target_semaphore(%5 : memref<!tpu.dma_semaphore, #tpu.memory_space<semaphore_mem>>)
    %c0 = arith.constant 0 : index
    %c0_0 = arith.constant 0 : index
    %6 = vector.load %arg0[%c0, %c0_0] : memref<16x32xbf16, #tpu.memory_space<vmem>>, vector<16x32xbf16>
    %c0_1 = arith.constant 0 : index
    %c0_2 = arith.constant 0 : index
    %7 = vector.load %arg1[%c0_1, %c0_2] : memref<32x128xbf16, #tpu.memory_space<vmem>>, vector<32x128xbf16>
    %cst = arith.constant dense<0.000000e+00> : vector<16x128xf32>
    %8 = tpu.matmul %6, %7, %cst {dimension_numbers = #tpu.dot_dimension_numbers<[1], [0], [0], [1], [0, 0, 1, 1], [], []>} : vector<16x32xbf16>, vector<32x128xbf16>, vector<16x128xf32> -> vector<16x128xf32>
    %c0_3 = arith.constant 0 : index
    %c0_4 = arith.constant 0 : index
    %9 = vector.load %arg2[%c0_3, %c0_4] : memref<1x128xf32, #tpu.memory_space<vmem>>, vector<1x128xf32>
    %c0_5 = arith.constant 0 : index
    %c0_6 = arith.constant 0 : index
    %10 = vector.load %arg3[%c0_5, %c0_6] : memref<1x128xf32, #tpu.memory_space<vmem>>, vector<1x128xf32>
    %c0_7 = arith.constant 0 : index
    %c0_8 = arith.constant 0 : index
    %11 = vector.load %arg4[%c0_7, %c0_8] : memref<1x128xf32, #tpu.memory_space<vmem>>, vector<1x128xf32>
    %cst_9 = arith.constant dense<0.000000e+00> : vector<128xf32>
    %12 = vector.multi_reduction <add>, %8, %cst_9 [0] : vector<16x128xf32> to vector<128xf32>
    %13 = vector.shape_cast %12 : vector<128xf32> to vector<1x128xf32>
    %14 = arith.mulf %8, %8 : vector<16x128xf32>
    %cst_10 = arith.constant dense<0.000000e+00> : vector<128xf32>
    %15 = vector.multi_reduction <add>, %14, %cst_10 [0] : vector<16x128xf32> to vector<128xf32>
    %16 = vector.shape_cast %15 : vector<128xf32> to vector<1x128xf32>
    %cst_11 = arith.constant 6.250000e-02 : f32
    %17 = vector.broadcast %cst_11 : f32 to vector<1x128xf32>
    %18 = arith.mulf %13, %17 : vector<1x128xf32>
    %cst_12 = arith.constant 6.250000e-02 : f32
    %19 = vector.broadcast %cst_12 : f32 to vector<1x128xf32>
    %20 = arith.mulf %16, %19 : vector<1x128xf32>
    %21 = arith.mulf %18, %18 : vector<1x128xf32>
    %22 = arith.subf %20, %21 : vector<1x128xf32>
    %23 = arith.addf %18, %9 : vector<1x128xf32>
    %cst_13 = arith.constant 9.99999974E-6 : f32
    %24 = vector.broadcast %cst_13 : f32 to vector<1x128xf32>
    %25 = arith.addf %22, %24 : vector<1x128xf32>
    %26 = math.rsqrt %25 : vector<1x128xf32>
    %27 = arith.mulf %10, %26 : vector<1x128xf32>
    %28 = arith.subf %9, %23 : vector<1x128xf32>
    %29 = arith.mulf %28, %27 : vector<1x128xf32>
    %30 = arith.addf %11, %29 : vector<1x128xf32>
    %31 = vector.broadcast %27 : vector<1x128xf32> to vector<16x128xf32>
    %32 = arith.mulf %8, %31 : vector<16x128xf32>
    %33 = vector.broadcast %30 : vector<1x128xf32> to vector<16x128xf32>
    %34 = arith.addf %32, %33 : vector<16x128xf32>
    %cst_14 = arith.constant 0.000000e+00 : f32
    %35 = vector.broadcast %cst_14 : f32 to vector<16x128xf32>
    %36 = arith.maximumf %34, %35 : vector<16x128xf32>
    %37 = arith.truncf %36 : vector<16x128xf32> to vector<16x128xbf16>
    %c0_i32_15 = arith.constant 0 : i32
    %38 = tpu.memref_slice %arg19[%c0_i32_15] : memref<3x!tpu.dma_semaphore, #tpu.memory_space<semaphore_mem>> -> memref<1x!tpu.dma_semaphore, #tpu.memory_space<semaphore_mem>>
    %39 = tpu.memref_squeeze %38 : memref<1x!tpu.dma_semaphore, #tpu.memory_space<semaphore_mem>> -> memref<!tpu.dma_semaphore, #tpu.memory_space<semaphore_mem>>
    tpu.wait_dma2 semaphore(%39 : memref<!tpu.dma_semaphore, #tpu.memory_space<semaphore_mem>>) src(%arg5 : memref<128x128xbf16, #tpu.memory_space<any>>) dst(%arg16 : memref<128x128xbf16, #tpu.memory_space<vmem>>)
    %c0_16 = arith.constant 0 : index
    %c0_17 = arith.constant 0 : index
    %40 = vector.load %arg16[%c0_16, %c0_17] : memref<128x128xbf16, #tpu.memory_space<vmem>>, vector<128x128xbf16>
    %cst_18 = arith.constant dense<0.000000e+00> : vector<16x128xf32>
    %41 = tpu.matmul %37, %40, %cst_18 {dimension_numbers = #tpu.dot_dimension_numbers<[1], [0], [0], [1], [0, 0, 1, 1], [], []>} : vector<16x128xbf16>, vector<128x128xbf16>, vector<16x128xf32> -> vector<16x128xf32>
    %c0_19 = arith.constant 0 : index
    %c0_20 = arith.constant 0 : index
    %42 = vector.load %arg6[%c0_19, %c0_20] : memref<1x128xf32, #tpu.memory_space<vmem>>, vector<1x128xf32>
    %c0_21 = arith.constant 0 : index
    %c0_22 = arith.constant 0 : index
    %43 = vector.load %arg7[%c0_21, %c0_22] : memref<1x128xf32, #tpu.memory_space<vmem>>, vector<1x128xf32>
    %c0_23 = arith.constant 0 : index
    %c0_24 = arith.constant 0 : index
    %44 = vector.load %arg8[%c0_23, %c0_24] : memref<1x128xf32, #tpu.memory_space<vmem>>, vector<1x128xf32>
    %cst_25 = arith.constant dense<0.000000e+00> : vector<128xf32>
    %45 = vector.multi_reduction <add>, %41, %cst_25 [0] : vector<16x128xf32> to vector<128xf32>
    %46 = vector.shape_cast %45 : vector<128xf32> to vector<1x128xf32>
    %47 = arith.mulf %41, %41 : vector<16x128xf32>
    %cst_26 = arith.constant dense<0.000000e+00> : vector<128xf32>
    %48 = vector.multi_reduction <add>, %47, %cst_26 [0] : vector<16x128xf32> to vector<128xf32>
    %49 = vector.shape_cast %48 : vector<128xf32> to vector<1x128xf32>
    %cst_27 = arith.constant 6.250000e-02 : f32
    %50 = vector.broadcast %cst_27 : f32 to vector<1x128xf32>
    %51 = arith.mulf %46, %50 : vector<1x128xf32>
    %cst_28 = arith.constant 6.250000e-02 : f32
    %52 = vector.broadcast %cst_28 : f32 to vector<1x128xf32>
    %53 = arith.mulf %49, %52 : vector<1x128xf32>
    %54 = arith.mulf %51, %51 : vector<1x128xf32>
    %55 = arith.subf %53, %54 : vector<1x128xf32>
    %56 = arith.addf %51, %42 : vector<1x128xf32>
    %cst_29 = arith.constant 9.99999974E-6 : f32
    %57 = vector.broadcast %cst_29 : f32 to vector<1x128xf32>
    %58 = arith.addf %55, %57 : vector<1x128xf32>
    %59 = math.rsqrt %58 : vector<1x128xf32>
    %60 = arith.mulf %43, %59 : vector<1x128xf32>
    %61 = arith.subf %42, %56 : vector<1x128xf32>
    %62 = arith.mulf %61, %60 : vector<1x128xf32>
    %63 = arith.addf %44, %62 : vector<1x128xf32>
    %64 = vector.broadcast %60 : vector<1x128xf32> to vector<16x128xf32>
    %65 = arith.mulf %41, %64 : vector<16x128xf32>
    %66 = vector.broadcast %63 : vector<1x128xf32> to vector<16x128xf32>
    %67 = arith.addf %65, %66 : vector<16x128xf32>
    %cst_30 = arith.constant 0.000000e+00 : f32
    %68 = vector.broadcast %cst_30 : f32 to vector<16x128xf32>
    %69 = arith.maximumf %67, %68 : vector<16x128xf32>
    %70 = arith.truncf %69 : vector<16x128xf32> to vector<16x128xbf16>
    %c1_i32_31 = arith.constant 1 : i32
    %71 = tpu.memref_slice %arg19[%c1_i32_31] : memref<3x!tpu.dma_semaphore, #tpu.memory_space<semaphore_mem>> -> memref<1x!tpu.dma_semaphore, #tpu.memory_space<semaphore_mem>>
    %72 = tpu.memref_squeeze %71 : memref<1x!tpu.dma_semaphore, #tpu.memory_space<semaphore_mem>> -> memref<!tpu.dma_semaphore, #tpu.memory_space<semaphore_mem>>
    tpu.wait_dma2 semaphore(%72 : memref<!tpu.dma_semaphore, #tpu.memory_space<semaphore_mem>>) src(%arg9 : memref<128x128xbf16, #tpu.memory_space<any>>) dst(%arg17 : memref<128x128xbf16, #tpu.memory_space<vmem>>)
    %c0_32 = arith.constant 0 : index
    %c0_33 = arith.constant 0 : index
    %73 = vector.load %arg17[%c0_32, %c0_33] : memref<128x128xbf16, #tpu.memory_space<vmem>>, vector<128x128xbf16>
    %cst_34 = arith.constant dense<0.000000e+00> : vector<16x128xf32>
    %74 = tpu.matmul %70, %73, %cst_34 {dimension_numbers = #tpu.dot_dimension_numbers<[1], [0], [0], [1], [0, 0, 1, 1], [], []>} : vector<16x128xbf16>, vector<128x128xbf16>, vector<16x128xf32> -> vector<16x128xf32>
    %c0_35 = arith.constant 0 : index
    %c0_36 = arith.constant 0 : index
    %75 = vector.load %arg10[%c0_35, %c0_36] : memref<1x128xf32, #tpu.memory_space<vmem>>, vector<1x128xf32>
    %c0_37 = arith.constant 0 : index
    %c0_38 = arith.constant 0 : index
    %76 = vector.load %arg11[%c0_37, %c0_38] : memref<1x128xf32, #tpu.memory_space<vmem>>, vector<1x128xf32>
    %c0_39 = arith.constant 0 : index
    %c0_40 = arith.constant 0 : index
    %77 = vector.load %arg12[%c0_39, %c0_40] : memref<1x128xf32, #tpu.memory_space<vmem>>, vector<1x128xf32>
    %cst_41 = arith.constant dense<0.000000e+00> : vector<128xf32>
    %78 = vector.multi_reduction <add>, %74, %cst_41 [0] : vector<16x128xf32> to vector<128xf32>
    %79 = vector.shape_cast %78 : vector<128xf32> to vector<1x128xf32>
    %80 = arith.mulf %74, %74 : vector<16x128xf32>
    %cst_42 = arith.constant dense<0.000000e+00> : vector<128xf32>
    %81 = vector.multi_reduction <add>, %80, %cst_42 [0] : vector<16x128xf32> to vector<128xf32>
    %82 = vector.shape_cast %81 : vector<128xf32> to vector<1x128xf32>
    %cst_43 = arith.constant 6.250000e-02 : f32
    %83 = vector.broadcast %cst_43 : f32 to vector<1x128xf32>
    %84 = arith.mulf %79, %83 : vector<1x128xf32>
    %cst_44 = arith.constant 6.250000e-02 : f32
    %85 = vector.broadcast %cst_44 : f32 to vector<1x128xf32>
    %86 = arith.mulf %82, %85 : vector<1x128xf32>
    %87 = arith.mulf %84, %84 : vector<1x128xf32>
    %88 = arith.subf %86, %87 : vector<1x128xf32>
    %89 = arith.addf %84, %75 : vector<1x128xf32>
    %cst_45 = arith.constant 9.99999974E-6 : f32
    %90 = vector.broadcast %cst_45 : f32 to vector<1x128xf32>
    %91 = arith.addf %88, %90 : vector<1x128xf32>
    %92 = math.rsqrt %91 : vector<1x128xf32>
    %93 = arith.mulf %76, %92 : vector<1x128xf32>
    %94 = arith.subf %75, %89 : vector<1x128xf32>
    %95 = arith.mulf %94, %93 : vector<1x128xf32>
    %96 = arith.addf %77, %95 : vector<1x128xf32>
    %97 = vector.broadcast %93 : vector<1x128xf32> to vector<16x128xf32>
    %98 = arith.mulf %74, %97 : vector<16x128xf32>
    %99 = vector.broadcast %96 : vector<1x128xf32> to vector<16x128xf32>
    %100 = arith.addf %98, %99 : vector<16x128xf32>
    %cst_46 = arith.constant 0.000000e+00 : f32
    %101 = vector.broadcast %cst_46 : f32 to vector<16x128xf32>
    %102 = arith.maximumf %100, %101 : vector<16x128xf32>
    %103 = arith.truncf %102 : vector<16x128xf32> to vector<16x128xbf16>
    %c2_i32_47 = arith.constant 2 : i32
    %104 = tpu.memref_slice %arg19[%c2_i32_47] : memref<3x!tpu.dma_semaphore, #tpu.memory_space<semaphore_mem>> -> memref<1x!tpu.dma_semaphore, #tpu.memory_space<semaphore_mem>>
    %105 = tpu.memref_squeeze %104 : memref<1x!tpu.dma_semaphore, #tpu.memory_space<semaphore_mem>> -> memref<!tpu.dma_semaphore, #tpu.memory_space<semaphore_mem>>
    tpu.wait_dma2 semaphore(%105 : memref<!tpu.dma_semaphore, #tpu.memory_space<semaphore_mem>>) src(%arg13 : memref<128x128xbf16, #tpu.memory_space<any>>) dst(%arg18 : memref<128x128xbf16, #tpu.memory_space<vmem>>)
    %c0_48 = arith.constant 0 : index
    %c0_49 = arith.constant 0 : index
    %106 = vector.load %arg18[%c0_48, %c0_49] : memref<128x128xbf16, #tpu.memory_space<vmem>>, vector<128x128xbf16>
    %cst_50 = arith.constant dense<0.000000e+00> : vector<16x128xf32>
    %107 = tpu.matmul %103, %106, %cst_50 {dimension_numbers = #tpu.dot_dimension_numbers<[1], [0], [0], [1], [0, 0, 1, 1], [], []>} : vector<16x128xbf16>, vector<128x128xbf16>, vector<16x128xf32> -> vector<16x128xf32>
    %c0_51 = arith.constant 0 : index
    %c0_52 = arith.constant 0 : index
    %108 = vector.load %arg14[%c0_51, %c0_52] : memref<1x128xf32, #tpu.memory_space<vmem>>, vector<1x128xf32>
    %109 = vector.broadcast %108 : vector<1x128xf32> to vector<16x128xf32>
    %110 = arith.addf %107, %109 : vector<16x128xf32>
    %c0_53 = arith.constant 0 : index
    %c0_54 = arith.constant 0 : index
    %111 = vector.load %arg15[%c0_53, %c0_54] : memref<16x128xf32, #tpu.memory_space<vmem>>, vector<16x128xf32>
    tpu.vector_store %arg15[%c0_53, %c0_54], %110 {strides = array<i32>} : memref<16x128xf32, #tpu.memory_space<vmem>>, vector<16x128xf32>,
    return
  }
}

</mosaic_0001>

<bundles_post_ra>
// kernel: projector_forward.1
= control target key start
LH: loop header
LB: loop body
LE: loop exit
PB: predicated region body
PF: predicated region fallthrough
CT: control target
= control target key end

     0   :  { %20 = vsyncpa [#allocation7], 0  ;;  %s1017_s0 = inlined_call_operand.vmem [shape: bf16[16,32], index: 0, kind: input, shape index: {}]   ;;  %s1018_s1 = inlined_call_operand.vmem [shape: bf16[32,128], index: 1, kind: input, shape index: {}]   ;;  %s1019_s2 = inlined_call_operand.vmem [shape: f32[1,128], index: 2, kind: input, shape index: {}]   ;;  %s1020_s3 = inlined_call_operand.vmem [shape: f32[1,128], index: 3, kind: input, shape index: {}]   ;;  %s1021_s4 = inlined_call_operand.vmem [shape: f32[1,128], index: 4, kind: input, shape index: {}]   ;;  %s1022_s5 = inlined_call_operand.vmem [shape: bf16[128,128], index: 5, kind: input, shape index: {}]   ;;  %s1023_s6 = inlined_call_operand.vmem [shape: f32[1,128], index: 6, kind: input, shape index: {}]   ;;  %s1024_s7 = inlined_call_operand.vmem [shape: f32[1,128], index: 7, kind: input, shape index: {}]   ;;  %s1025_s8 = inlined_call_operand.vmem [shape: f32[1,128], index: 8, kind: input, shape index: {}]   ;;  %s1026_s9 = inlined_call_operand.vmem [shape: bf16[128,128], index: 9, kind: input, shape index: {}]   ;;  %s1027_s10 = inlined_call_operand.vmem [shape: f32[1,128], index: 10, kind: input, shape index: {}]   ;;  %s1028_s11 = inlined_call_operand.vmem [shape: f32[1,128], index: 11, kind: input, shape index: {}]   ;;  %s1029_s12 = inlined_call_operand.vmem [shape: f32[1,128], index: 12, kind: input, shape index: {}]   ;;  %s1030_s13 = inlined_call_operand.vmem [shape: bf16[128,128], index: 13, kind: input, shape index: {}]   ;;  %s1031_s14 = inlined_call_operand.vmem [shape: f32[1,128], index: 14, kind: input, shape index: {}]   ;;  %s1032_s15 = inlined_call_operand.hbm [shape: f32[16,128], index: 15, kind: output, shape index: {}]  }
   0x1   :  { %v56_v0 = vld [vmem:[%s1022_s5] sm:$0xff]  ;;  %v58_v1 = vld [vmem:[%s1022_s5 + $0x8] sm:$0xff]  ;;  %v60_v2 = vld [vmem:[%s1022_s5 + $0x10] sm:$0xff] }
   0x2   :  { %57 = vst [vmem:[#allocation2 + $0x30] sm:$0xff] %v56_v0  ;;  %v62_v3 = vld [vmem:[%s1022_s5 + $0x18] sm:$0xff]  ;;  %v64_v4 = vld [vmem:[%s1022_s5 + $0x20] sm:$0xff]  ;;  %v66_v5 = vld [vmem:[%s1022_s5 + $0x28] sm:$0xff] }
   0x3   :  { %59 = vst [vmem:[#allocation2] sm:$0xff] %v58_v1  ;;  %v68_v6 = vld [vmem:[%s1022_s5 + $0x30] sm:$0xff]  ;;  %v70_v7 = vld [vmem:[%s1022_s5 + $0x38] sm:$0xff] }
   0x4   :  { %61 = vst [vmem:[#allocation2 + $0x18] sm:$0xff] %v60_v2 }
   0x5   :  { %63 = vst [vmem:[#allocation2 + $0x10] sm:$0xff] %v62_v3 }
   0x6   :  { %65 = vst [vmem:[#allocation2 + $0x8] sm:$0xff] %v64_v4 }
   0x7   :  { %67 = vst [vmem:[#allocation2 + $0x20] sm:$0xff] %v66_v5 }
   0x8   :  { %69 = vst [vmem:[#allocation2 + $0x28] sm:$0xff] %v68_v6 }
   0x9   :  { %71 = vst [vmem:[#allocation2 + $0x38] sm:$0xff] %v70_v7 }
   0xa   :  { %77 = vsyncadd [#allocation5], 1024  ;;  %v89_v8 = vld [vmem:[%s1026_s9] sm:$0xff]  ;;  %v91_v9 = vld [vmem:[%s1026_s9 + $0x8] sm:$0xff] }
   0xb   :  { %90 = vst [vmem:[#allocation3] sm:$0xff] %v89_v8  ;;  %v93_v10 = vld [vmem:[%s1026_s9 + $0x10] sm:$0xff]  ;;  %v95_v11 = vld [vmem:[%s1026_s9 + $0x18] sm:$0xff]  ;;  %v97_v12 = vld [vmem:[%s1026_s9 + $0x20] sm:$0xff] }
   0xc   :  { %92 = vst [vmem:[#allocation3 + $0x18] sm:$0xff] %v91_v9  ;;  %v99_v13 = vld [vmem:[%s1026_s9 + $0x28] sm:$0xff]  ;;  %v101_v14 = vld [vmem:[%s1026_s9 + $0x30] sm:$0xff]  ;;  %v103_v15 = vld [vmem:[%s1026_s9 + $0x38] sm:$0xff] }
   0xd   :  { %94 = vst [vmem:[#allocation3 + $0x10] sm:$0xff] %v93_v10 }
   0xe   :  { %96 = vst [vmem:[#allocation3 + $0x20] sm:$0xff] %v95_v11 }
   0xf   :  { %98 = vst [vmem:[#allocation3 + $0x28] sm:$0xff] %v97_v12 }
  0x10   :  { %100 = vst [vmem:[#allocation3 + $0x8] sm:$0xff] %v99_v13 }
  0x11   :  { %102 = vst [vmem:[#allocation3 + $0x30] sm:$0xff] %v101_v14 }
  0x12   :  { %104 = vst [vmem:[#allocation3 + $0x38] sm:$0xff] %v103_v15 }
  0x13   :  { %110 = vsyncadd [#allocation5 + $0x1], 1024  ;;  %v122_v16 = vld [vmem:[%s1030_s13] sm:$0xff]  ;;  %v124_v17 = vld [vmem:[%s1030_s13 + $0x8] sm:$0xff] }
  0x14   :  { %123 = vst [vmem:[#allocation4 + $0x28] sm:$0xff] %v122_v16  ;;  %v126_v18 = vld [vmem:[%s1030_s13 + $0x10] sm:$0xff]  ;;  %v128_v19 = vld [vmem:[%s1030_s13 + $0x18] sm:$0xff]  ;;  %v130_v20 = vld [vmem:[%s1030_s13 + $0x20] sm:$0xff] }
  0x15   :  { %125 = vst [vmem:[#allocation4 + $0x20] sm:$0xff] %v124_v17  ;;  %v132_v21 = vld [vmem:[%s1030_s13 + $0x28] sm:$0xff]  ;;  %v134_v22 = vld [vmem:[%s1030_s13 + $0x30] sm:$0xff]  ;;  %v136_v23 = vld [vmem:[%s1030_s13 + $0x38] sm:$0xff] }
  0x16   :  { %127 = vst [vmem:[#allocation4 + $0x38] sm:$0xff] %v126_v18 }
  0x17   :  { %129 = vst [vmem:[#allocation4 + $0x10] sm:$0xff] %v128_v19 }
  0x18   :  { %131 = vst [vmem:[#allocation4 + $0x8] sm:$0xff] %v130_v20 }
  0x19   :  { %133 = vst [vmem:[#allocation4 + $0x30] sm:$0xff] %v132_v21 }
  0x1a   :  { %135 = vst [vmem:[#allocation4 + $0x18] sm:$0xff] %v134_v22 }
  0x1b   :  { %137 = vst [vmem:[#allocation4] sm:$0xff] %v136_v23 }
  0x1c   :  { %143 = vsyncadd [#allocation5 + $0x2], 1024  ;;  %v753_v24 = vld [vmem:[%s1018_s1 + $0x8] sm:$0xff]  ;;  %v752_v25 = vld [vmem:[%s1018_s1] sm:$0xff]  ;;  %vm167_vm0 = vcmask 261120  }
  0x1d   :  { %177 = vmatpush.bf16.msra.mxu0 %v753_v24  ;;  %v751_v26 = vld [vmem:[%s1017_s0] sm:$0xff] }
  0x1e   :  { %v185_v53 = vld [vmem:[%s1019_s2] sm:$0x1] }
  0x1f   :  { %v186_v57 = vld [vmem:[%s1020_s3] sm:$0x1] }
  0x20   :  { %v187_v62 = vld [vmem:[%s1021_s4] sm:$0x1] }
  0x21   :  { %178 = vmatpush.bf16.msra.mxu0 %v752_v25 }
  0x24   :  { %651 = vmatmul.msk.bf16.vlgmr.msra.gmra.mxu0 %vm167_vm0, %v751_v26 }
  0xa1   :  { %v180_v27 = vpop.f32.mrf.mxu0 }
  0xa2   :  { %v195_v29 = vmul.f32 %v180_v27, %v180_v27 }
  0xa9   :  { %v182_v28 = vpop.f32.mrf.mxu0 }
  0xaa   :  { %v188_v30 = vadd.f32 %v182_v28, %v180_v27  ;;  %v196_v31 = vmul.f32 %v182_v28, %v182_v28 }
  0xac   :  { %v189_v32 = vrot.slane %v188_v30, 4  ;;  %v197_v33 = vadd.f32 %v196_v31, %v195_v29 }
  0xae   :  { %v190_v34 = vadd.f32 %v189_v32, %v188_v30  ;;  %v198_v35 = vrot.slane %v197_v33, 4 }
  0xb0   :  { %v191_v36 = vrot.slane %v190_v34, 2  ;;  %v199_v37 = vadd.f32 %v198_v35, %v197_v33 }
  0xb2   :  { %v192_v38 = vadd.f32 %v191_v36, %v190_v34  ;;  %v200_v39 = vrot.slane %v199_v37, 2 }
  0xb4   :  { %v193_v40 = vrot.slane %v192_v38, 1  ;;  %v201_v41 = vadd.f32 %v200_v39, %v199_v37 }
  0xb6   :  { %v194_v42 = vadd.f32 %v193_v40, %v192_v38  ;;  %v202_v43 = vrot.slane %v201_v41, 1 }
  0xb8   :  { %v203_v44 = vadd.f32 %v202_v43, %v201_v41  ;;  %v204_v45 = vmul.f32 0.0625, %v194_v42 }
  0xba   :  { %v205_v46 = vmul.f32 0.0625, %v203_v44  ;;  %v206_v47 = vmul.f32 %v204_v45, %v204_v45  ;;  %v208_v56 = vadd.f32 %v204_v45, %v185_v53 }
  0xbc   :  { %v207_v48 = vsub.f32 %v205_v46, %v206_v47  ;;  %v221_v61 = vsub.f32 %v185_v53, %v208_v56 }
  0xbe   :  { %v209_v49 = vadd.f32 1e-05, %v207_v48 }
  0xc0   :  { %781 = vrsqrt.f32 %v209_v49  ;;  %vm216_vm2 = vweird.f32 %v209_v49 }
  0xc6   :  { %v782_v50 = vpop.eup %781 }
  0xc7   :  { %v211_v51 = vmul.f32 %v782_v50, %v209_v49  ;;  %vm217_vm1 = vweird.f32 %v782_v50 }
  0xc8   :  { %vm218_vm3 = vmor %vm216_vm2, %vm217_vm1 }
  0xc9   :  { %v212_v52 = vmul.f32 %v782_v50, %v211_v51 }
  0xcb   :  { %v213_v54 = vmul.f32 0.5, %v212_v52 }
  0xcd   :  { %v214_v55 = vsub.f32 1.5, %v213_v54 }
  0xcf   :  { %v215_v58 = vmul.f32 %v782_v50, %v214_v55 }
  0xd1   :  { %v219_v59 = vsel %vm218_vm3, %v782_v50, %v215_v58 }
  0xd2   :  { %v220_v60 = vmul.f32 %v219_v59, %v186_v57 }
  0xd4   :  { %v222_v63 = vmul.f32 %v221_v61, %v220_v60  ;;  %v225_v0 = vperm.slane %v220_v60, 0 }
  0xd6   :  { %v223_v1 = vadd.f32 %v222_v63, %v187_v62  ;;  %v227_v2 = vmul.f32 %v225_v0, %v180_v27  ;;  %v228_v3 = vmul.f32 %v225_v0, %v182_v28 }
  0xd8   :  { %v230_v4 = vperm.slane %v223_v1, 0 }
  0xda   :  { %v232_v5 = vadd.f32 %v230_v4, %v227_v2  ;;  %v233_v6 = vadd.f32 %v230_v4, %v228_v3 }
  0xdc   :  { %v234_v7 = vmax.f32 %v232_v5, 0.0  ;;  %v235_v8 = vmax.f32 %v233_v6, 0.0 }
  0xde   :  { %v236_v9 = vpack.c.bf16 %v235_v8, %v234_v7 }
  0xdf   :  { %812 = dma.done.wait [#allocation5], 1024 }
  0xe0   :  { %813 = vsyncadd [#allocation5], 4294966272  ;;  %v761_v10 = vld [vmem:[#allocation2 + $0x38] sm:$0xff]  ;;  %v760_v11 = vld [vmem:[#allocation2 + $0x28] sm:$0xff] }
  0xe1   :  { %305 = vmatpush.bf16.msra.mxu1 %v761_v10  ;;  %v759_v12 = vld [vmem:[#allocation2 + $0x20] sm:$0xff]  ;;  %v758_v13 = vld [vmem:[#allocation2 + $0x8] sm:$0xff]  ;;  %v757_v14 = vld [vmem:[#allocation2 + $0x10] sm:$0xff] }
  0xe2   :  { %v756_v15 = vld [vmem:[#allocation2 + $0x18] sm:$0xff]  ;;  %v755_v16 = vld [vmem:[#allocation2] sm:$0xff]  ;;  %v754_v17 = vld [vmem:[#allocation2 + $0x30] sm:$0xff] }
  0xe3   :  { %v319_v44 = vld [vmem:[%s1023_s6] sm:$0x1] }
  0xe4   :  { %v320_v48 = vld [vmem:[%s1024_s7] sm:$0x1] }
  0xe5   :  { %306 = vmatpush.bf16.msra.mxu1 %v760_v11  ;;  %v321_v53 = vld [vmem:[%s1025_s8] sm:$0x1] }
  0xe9   :  { %307 = vmatpush.bf16.msra.mxu1 %v759_v12 }
  0xed   :  { %308 = vmatpush.bf16.msra.mxu1 %v758_v13 }
  0xf1   :  { %309 = vmatpush.bf16.msra.mxu1 %v757_v14 }
  0xf5   :  { %310 = vmatpush.bf16.msra.mxu1 %v756_v15 }
  0xf9   :  { %311 = vmatpush.bf16.msra.mxu1 %v755_v16 }
  0xfd   :  { %312 = vmatpush.bf16.msra.mxu1 %v754_v17 }
 0x100   :  { %313 = vmatmul.bf16.vlgmr.msra.gmra.mxu1 %v236_v9 }
 0x17d   :  { %v314_v18 = vpop.f32.mrf.mxu1 }
 0x17e   :  { %v329_v20 = vmul.f32 %v314_v18, %v314_v18 }
 0x185   :  { %v316_v19 = vpop.f32.mrf.mxu1 }
 0x186   :  { %v322_v21 = vadd.f32 %v316_v19, %v314_v18  ;;  %v330_v22 = vmul.f32 %v316_v19, %v316_v19 }
 0x188   :  { %v323_v23 = vrot.slane %v322_v21, 4  ;;  %v331_v24 = vadd.f32 %v330_v22, %v329_v20 }
 0x18a   :  { %v324_v25 = vadd.f32 %v323_v23, %v322_v21  ;;  %v332_v26 = vrot.slane %v331_v24, 4 }
 0x18c   :  { %v325_v27 = vrot.slane %v324_v25, 2  ;;  %v333_v28 = vadd.f32 %v332_v26, %v331_v24 }
 0x18e   :  { %v326_v29 = vadd.f32 %v325_v27, %v324_v25  ;;  %v334_v30 = vrot.slane %v333_v28, 2 }
 0x190   :  { %v327_v31 = vrot.slane %v326_v29, 1  ;;  %v335_v32 = vadd.f32 %v334_v30, %v333_v28 }
 0x192   :  { %v328_v33 = vadd.f32 %v327_v31, %v326_v29  ;;  %v336_v34 = vrot.slane %v335_v32, 1 }
 0x194   :  { %v337_v35 = vadd.f32 %v336_v34, %v335_v32  ;;  %v338_v36 = vmul.f32 0.0625, %v328_v33 }
 0x196   :  { %v339_v37 = vmul.f32 0.0625, %v337_v35  ;;  %v340_v38 = vmul.f32 %v338_v36, %v338_v36  ;;  %v342_v47 = vadd.f32 %v338_v36, %v319_v44 }
 0x198   :  { %v341_v39 = vsub.f32 %v339_v37, %v340_v38  ;;  %v355_v52 = vsub.f32 %v319_v44, %v342_v47 }
 0x19a   :  { %v343_v40 = vadd.f32 1e-05, %v341_v39 }
 0x19c   :  { %783 = vrsqrt.f32 %v343_v40  ;;  %vm350_vm5 = vweird.f32 %v343_v40 }
 0x1a2   :  { %v784_v41 = vpop.eup %783 }
 0x1a3   :  { %v345_v42 = vmul.f32 %v784_v41, %v343_v40  ;;  %vm351_vm4 = vweird.f32 %v784_v41 }
 0x1a4   :  { %vm352_vm6 = vmor %vm350_vm5, %vm351_vm4 }
 0x1a5   :  { %v346_v43 = vmul.f32 %v784_v41, %v345_v42 }
 0x1a7   :  { %v347_v45 = vmul.f32 0.5, %v346_v43 }
 0x1a9   :  { %v348_v46 = vsub.f32 1.5, %v347_v45 }
 0x1ab   :  { %v349_v49 = vmul.f32 %v784_v41, %v348_v46 }
 0x1ad   :  { %v353_v50 = vsel %vm352_vm6, %v784_v41, %v349_v49 }
 0x1ae   :  { %v354_v51 = vmul.f32 %v353_v50, %v320_v48 }
 0x1b0   :  { %v356_v54 = vmul.f32 %v355_v52, %v354_v51  ;;  %v359_v55 = vperm.slane %v354_v51, 0 }
 0x1b2   :  { %v357_v56 = vadd.f32 %v356_v54, %v321_v53  ;;  %v361_v57 = vmul.f32 %v359_v55, %v314_v18  ;;  %v362_v58 = vmul.f32 %v359_v55, %v316_v19 }
 0x1b4   :  { %v364_v59 = vperm.slane %v357_v56, 0 }
 0x1b6   :  { %v366_v60 = vadd.f32 %v364_v59, %v361_v57  ;;  %v367_v61 = vadd.f32 %v364_v59, %v362_v58 }
 0x1b8   :  { %v368_v62 = vmax.f32 %v366_v60, 0.0  ;;  %v369_v63 = vmax.f32 %v367_v61, 0.0 }
 0x1ba   :  { %v370_v0 = vpack.c.bf16 %v369_v63, %v368_v62 }
 0x1bb   :  { %814 = dma.done.wait [#allocation5 + $0x1], 1024 }
 0x1bc   :  { %815 = vsyncadd [#allocation5 + $0x1], 4294966272  ;;  %v769_v1 = vld [vmem:[#allocation3 + $0x38] sm:$0xff]  ;;  %v768_v2 = vld [vmem:[#allocation3 + $0x30] sm:$0xff] }
 0x1bd   :  { %437 = vmatpush.bf16.msra.mxu2 %v769_v1  ;;  %v767_v3 = vld [vmem:[#allocation3 + $0x8] sm:$0xff]  ;;  %v765_v5 = vld [vmem:[#allocation3 + $0x20] sm:$0xff]  ;;  %v764_v6 = vld [vmem:[#allocation3 + $0x10] sm:$0xff] }
 0x1be   :  { %v766_v4 = vld [vmem:[#allocation3 + $0x28] sm:$0xff]  ;;  %v763_v7 = vld [vmem:[#allocation3 + $0x18] sm:$0xff]  ;;  %v762_v8 = vld [vmem:[#allocation3] sm:$0xff] }
 0x1bf   :  { %v451_v35 = vld [vmem:[%s1027_s10] sm:$0x1] }
 0x1c0   :  { %v452_v39 = vld [vmem:[%s1028_s11] sm:$0x1] }
 0x1c1   :  { %438 = vmatpush.bf16.msra.mxu2 %v768_v2  ;;  %v453_v44 = vld [vmem:[%s1029_s12] sm:$0x1] }
 0x1c5   :  { %439 = vmatpush.bf16.msra.mxu2 %v767_v3 }
 0x1c9   :  { %440 = vmatpush.bf16.msra.mxu2 %v766_v4 }
 0x1cd   :  { %441 = vmatpush.bf16.msra.mxu2 %v765_v5 }
 0x1d1   :  { %442 = vmatpush.bf16.msra.mxu2 %v764_v6 }
 0x1d5   :  { %443 = vmatpush.bf16.msra.mxu2 %v763_v7 }
 0x1d9   :  { %444 = vmatpush.bf16.msra.mxu2 %v762_v8 }
 0x1dc   :  { %445 = vmatmul.bf16.vlgmr.msra.gmra.mxu2 %v370_v0 }
 0x25f   :  { %v446_v9 = vpop.f32.mrf.mxu2 }
 0x260   :  { %v461_v11 = vmul.f32 %v446_v9, %v446_v9 }
 0x267   :  { %v448_v10 = vpop.f32.mrf.mxu2 }
 0x268   :  { %v454_v12 = vadd.f32 %v448_v10, %v446_v9  ;;  %v462_v13 = vmul.f32 %v448_v10, %v448_v10 }
 0x26a   :  { %v455_v14 = vrot.slane %v454_v12, 4  ;;  %v463_v15 = vadd.f32 %v462_v13, %v461_v11 }
 0x26c   :  { %v456_v16 = vadd.f32 %v455_v14, %v454_v12  ;;  %v464_v17 = vrot.slane %v463_v15, 4 }
 0x26e   :  { %v457_v18 = vrot.slane %v456_v16, 2  ;;  %v465_v19 = vadd.f32 %v464_v17, %v463_v15 }
 0x270   :  { %v458_v20 = vadd.f32 %v457_v18, %v456_v16  ;;  %v466_v21 = vrot.slane %v465_v19, 2 }
 0x272   :  { %v459_v22 = vrot.slane %v458_v20, 1  ;;  %v467_v23 = vadd.f32 %v466_v21, %v465_v19 }
 0x274   :  { %v460_v24 = vadd.f32 %v459_v22, %v458_v20  ;;  %v468_v25 = vrot.slane %v467_v23, 1 }
 0x276   :  { %v469_v26 = vadd.f32 %v468_v25, %v467_v23  ;;  %v470_v27 = vmul.f32 0.0625, %v460_v24 }
 0x278   :  { %v471_v28 = vmul.f32 0.0625, %v469_v26  ;;  %v472_v29 = vmul.f32 %v470_v27, %v470_v27  ;;  %v474_v38 = vadd.f32 %v470_v27, %v451_v35 }
 0x27a   :  { %v473_v30 = vsub.f32 %v471_v28, %v472_v29  ;;  %v487_v43 = vsub.f32 %v451_v35, %v474_v38 }
 0x27c   :  { %v475_v31 = vadd.f32 1e-05, %v473_v30 }
 0x27e   :  { %785 = vrsqrt.f32 %v475_v31  ;;  %vm482_vm8 = vweird.f32 %v475_v31 }
 0x284   :  { %v786_v32 = vpop.eup %785 }
 0x285   :  { %v477_v33 = vmul.f32 %v786_v32, %v475_v31  ;;  %vm483_vm7 = vweird.f32 %v786_v32 }
 0x286   :  { %vm484_vm9 = vmor %vm482_vm8, %vm483_vm7 }
 0x287   :  { %v478_v34 = vmul.f32 %v786_v32, %v477_v33 }
 0x289   :  { %v479_v36 = vmul.f32 0.5, %v478_v34 }
 0x28b   :  { %v480_v37 = vsub.f32 1.5, %v479_v36 }
 0x28d   :  { %v481_v40 = vmul.f32 %v786_v32, %v480_v37 }
 0x28f   :  { %v485_v41 = vsel %vm484_vm9, %v786_v32, %v481_v40 }
 0x290   :  { %v486_v42 = vmul.f32 %v485_v41, %v452_v39 }
 0x292   :  { %v488_v45 = vmul.f32 %v487_v43, %v486_v42  ;;  %v491_v46 = vperm.slane %v486_v42, 0 }
 0x294   :  { %v489_v47 = vadd.f32 %v488_v45, %v453_v44  ;;  %v493_v48 = vmul.f32 %v491_v46, %v446_v9  ;;  %v494_v49 = vmul.f32 %v491_v46, %v448_v10 }
 0x296   :  { %v496_v50 = vperm.slane %v489_v47, 0 }
 0x298   :  { %v498_v51 = vadd.f32 %v496_v50, %v493_v48  ;;  %v499_v52 = vadd.f32 %v496_v50, %v494_v49 }
 0x29a   :  { %v500_v53 = vmax.f32 %v498_v51, 0.0  ;;  %v501_v54 = vmax.f32 %v499_v52, 0.0 }
 0x29c   :  { %v502_v55 = vpack.c.bf16 %v501_v54, %v500_v53 }
 0x29d   :  { %816 = dma.done.wait [#allocation5 + $0x2], 1024 }
 0x29e   :  { %817 = vsyncadd [#allocation5 + $0x2], 4294966272  ;;  %v777_v56 = vld [vmem:[#allocation4] sm:$0xff]  ;;  %v776_v57 = vld [vmem:[#allocation4 + $0x18] sm:$0xff]  ;;  %s820_s12 = smov [#allocation6]   ;;  %s595_s19 = sshll.u32 %s1032_s15, 4  ;;  %s596_s19 = int_to_ptr.hbm [resolvable:$true] %s595_s19 }
 0x29f   :  { %573 = vmatpush.bf16.msra.mxu3 %v777_v56  ;;  %v775_v58 = vld [vmem:[#allocation4 + $0x30] sm:$0xff]  ;;  %v774_v59 = vld [vmem:[#allocation4 + $0x8] sm:$0xff]  ;;  %v772_v61 = vld [vmem:[#allocation4 + $0x38] sm:$0xff]  ;;  %s593_s16 = sshll.u32 %s820_s12, 4  ;;  %s821_s20 = smov 128   ;;  %s594_s16 = int_to_ptr.vmem [resolvable:$true] %s593_s16 }
 0x2a0   :  { %v773_v60 = vld [vmem:[#allocation4 + $0x10] sm:$0xff]  ;;  %v771_v62 = vld [vmem:[#allocation4 + $0x20] sm:$0xff]  ;;  %v770_v63 = vld [vmem:[#allocation4 + $0x28] sm:$0xff]  ;;  %s822_s21 = smov 8  }
 0x2a1   :  { %v787_v0 = vld [vmem:[%s1031_s14] ss:$0 sm:$0xff] }
 0x2a3   :  { %574 = vmatpush.bf16.msra.mxu3 %v776_v57 }
 0x2a7   :  { %575 = vmatpush.bf16.msra.mxu3 %v775_v58 }
 0x2ab   :  { %576 = vmatpush.bf16.msra.mxu3 %v774_v59 }
 0x2af   :  { %577 = vmatpush.bf16.msra.mxu3 %v773_v60 }
 0x2b3   :  { %578 = vmatpush.bf16.msra.mxu3 %v772_v61 }
 0x2b7   :  { %579 = vmatpush.bf16.msra.mxu3 %v771_v62 }
 0x2bb   :  { %580 = vmatpush.bf16.msra.mxu3 %v770_v63 }
 0x2be   :  { %581 = vmatmul.bf16.vlgmr.msra.gmra.mxu3 %v502_v55 }
 0x341   :  { %v582_v1 = vpop.f32.mrf.mxu3 }
 0x342   :  { %v583_v2 = vadd.f32 %v787_v0, %v582_v1 }
 0x344   :  { %587 = vst [vmem:[#allocation6] sm:$0xff] %v583_v2 }
 0x349   :  { %v584_v3 = vpop.f32.mrf.mxu3 }
 0x34a   :  { %v585_v4 = vadd.f32 %v787_v0, %v584_v3 }
 0x34c   :  { %588 = vst [vmem:[#allocation6 + $0x8] sm:$0xff] %v585_v4 }
 0x34d   :  { %601 = dma.vmem_to_hbm [thread:$0]  %s594_s16, 256, %s596_s19, [#allocation7], %s821_s20, %s821_s20, %s822_s21  }
 0x34e   :  { %818 = dma.done.wait [#allocation7], 256  }
 0x34f   :  { %819 = vsyncadd [#allocation7], 4294967040 }
 0x350   :  { %606 = vsyncpa [#allocation7], 1 }
 0x351   :  { %607 = vsyncmov [#allocation5] }
 0x354   :  { %s608_s14 = vpop.sfrf %607 }
 0x355   :  { %p748_p0 = scmp.ne.s32.totalorder %s608_s14, 0 }
 0x357   :  { %612 = shalt.err (%p748_p0)  }
 0x358   :  { %614 = vsyncmov [#allocation5 + $0x1] }
 0x35b   :  { %s615_s22 = vpop.sfrf %614 }
 0x35c   :  { %p749_p1 = scmp.ne.s32.totalorder %s615_s22, 0 }
 0x35e   :  { %619 = shalt.err (%p749_p1)  }
 0x35f   :  { %621 = vsyncmov [#allocation5 + $0x2] }
 0x362   :  { %s622_s15 = vpop.sfrf %621 }
 0x363   :  { %p750_p2 = scmp.ne.s32.totalorder %s622_s15, 0 }
 0x365   :  { %626 = shalt.err (%p750_p2)  }

</bundles_post_ra>
